<compile_context>
chip_gen: v7x
topology: tpu7x:2x2x1
jax: 0.10.0
libtpu: 0.0.40
codegen_flags: <defaults>
</compile_context>

<pallas_src>
import functools

import jax
import jax.numpy as jnp
from jax.experimental import pallas as pl
from jax.experimental.pallas import tpu as pltpu


# ----------------------------------------------------------------------------
# Gridded, lane-dense kernel (main path).
# ----------------------------------------------------------------------------
def _stddev_tiled_kernel(x_ref, o_ref, acc_ref, *, n_main_tiles, n_main_cols,
                         inv_batch):
    """Grid axis 0 walks lane-dense (B, T) tiles of the flattened output.

    i <  n_main_tiles : passthrough copy of x + partial sum of per-column std.
    i >= n_main_tiles : broadcast the finished scalar into the extra channel.
    """
    i = pl.program_id(0)

    @pl.when(i == 0)
    def _init():
        acc_ref[0] = 0.0

    @pl.when(i < n_main_tiles)
    def _copy_and_reduce():
        xt = x_ref[...]                       # (B, T), input dtype
        o_ref[...] = xt                       # lane-dense passthrough (no cast)
        xf = xt.astype(jnp.float32)
        mu = jnp.sum(xf, axis=0, keepdims=True) * inv_batch          # (1, T)
        var = jnp.sum((xf - mu) * (xf - mu), axis=0, keepdims=True) * inv_batch
        std = jnp.sqrt(var + 1e-8)                                    # (1, T)
        acc_ref[0] += jnp.sum(std)

    @pl.when(i >= n_main_tiles)
    def _broadcast_scalar():
        s = acc_ref[0] / float(n_main_cols)
        o_ref[...] = jnp.full(o_ref.shape, s, dtype=o_ref.dtype)


def _pick_tile_cols(hw, batch):
    """Largest multiple-of-128 divisor of hw within a modest VMEM budget."""
    cands = [t for t in range(128, hw + 1, 128) if hw % t == 0]
    if not cands:
        return None
    # Keep per-tile f32 temporaries around <= ~2 MiB so double-buffered tiles
    # stay far below the 64 MiB (v7x) / 128 MiB (v5e/v6e) physical VMEM.
    budget_cols = max(128, (2 * 1024 * 1024) // (4 * batch))
    within = [t for t in cands if t <= budget_cols]
    return max(within) if within else min(cands)


# ----------------------------------------------------------------------------
# Whole-array fallback (H*W not a multiple of 128): still flattened/lane-dense.
# ----------------------------------------------------------------------------
def _stddev_whole_kernel(x_ref, o_ref, *, n_main, inv_batch):
    xt = x_ref[...]                                       # (B, F)
    xf = xt.astype(jnp.float32)
    mu = jnp.sum(xf, axis=0, keepdims=True) * inv_batch
    var = jnp.sum((xf - mu) * (xf - mu), axis=0, keepdims=True) * inv_batch
    std = jnp.sqrt(var + 1e-8)
    s = jnp.sum(std) / float(n_main)
    o_ref[:, :n_main] = xt
    extra_cols = o_ref.shape[1] - n_main
    o_ref[:, n_main:] = jnp.full((xt.shape[0], extra_cols), s, dtype=o_ref.dtype)


def _minibatch_stddev_whole(x):
    B, C, H, W = x.shape
    hw = H * W
    n_main = C * hw
    n_out = (C + 1) * hw
    isz = x.dtype.itemsize
    need = B * n_main * isz + B * n_out * isz + 4 * B * n_main * 4 + (2 << 20)
    vmem_limit = int(min(64 << 20, max(16 << 20, 2 * need)))
    kernel = functools.partial(_stddev_whole_kernel, n_main=n_main,
                               inv_batch=1.0 / B)
    out_flat = pl.pallas_call(
        kernel,
        out_shape=jax.ShapeDtypeStruct((B, n_out), x.dtype),
        in_specs=[pl.BlockSpec(memory_space=pltpu.MemorySpace.VMEM)],
        out_specs=pl.BlockSpec(memory_space=pltpu.MemorySpace.VMEM),
        compiler_params=pltpu.CompilerParams(vmem_limit_bytes=vmem_limit),
    )(x.reshape(B, n_main))
    return out_flat.reshape(B, C + 1, H, W)


# ----------------------------------------------------------------------------
# Public wrapper: (B, C, H, W) -> (B, C+1, H, W), matching MinibatchStdDev.
# ----------------------------------------------------------------------------
def minibatch_stddev(x):
    B, C, H, W = x.shape
    hw = H * W
    n_main = C * hw
    n_out = (C + 1) * hw

    tile = _pick_tile_cols(hw, B)
    if tile is None:
        # H*W has no multiple-of-128 divisor (e.g. the 7x7 final block):
        # use the ungridded, still lane-dense fallback.
        return _minibatch_stddev_whole(x)

    n_main_tiles = n_main // tile
    n_total_tiles = n_out // tile

    x_flat = x.reshape(B, n_main)

    kernel = functools.partial(
        _stddev_tiled_kernel,
        n_main_tiles=n_main_tiles,
        n_main_cols=n_main,
        inv_batch=1.0 / B,
    )

    # Extra-channel tiles re-fetch (and ignore) the last main tile so the
    # input block index always stays in bounds.
    in_map = lambda i: (0, jnp.minimum(i, n_main_tiles - 1))
    out_map = lambda i: (0, i)

    isz = x.dtype.itemsize
    # 2x double-buffered input + output tiles, f32 temporaries, plus headroom.
    need = 4 * B * tile * isz + 4 * B * tile * 4 + (1 << 20)
    vmem_limit = int(min(64 << 20, max(16 << 20, 4 * need)))

    out_flat = pl.pallas_call(
        kernel,
        out_shape=jax.ShapeDtypeStruct((B, n_out), x.dtype),
        grid_spec=pltpu.PrefetchScalarGridSpec(
            num_scalar_prefetch=0,
            grid=(n_total_tiles,),
            in_specs=[pl.BlockSpec((B, tile), in_map)],
            out_specs=pl.BlockSpec((B, tile), out_map),
            scratch_shapes=[pltpu.SMEM((1,), jnp.float32)],
        ),
        compiler_params=pltpu.CompilerParams(
            # The scalar accumulator + deferred broadcast require sequential
            # grid order, hence "arbitrary" (a two-call split would allow
            # "parallel" on v7x's two TCs for the copy phase).
            dimension_semantics=("arbitrary",),
            vmem_limit_bytes=vmem_limit,
        ),
    )(x_flat)

    return out_flat.reshape(B, C + 1, H, W)


def _reference(x):
    """Pure-JAX reference mirroring the PyTorch module."""
    mu = jnp.mean(x, axis=0, keepdims=True)
    y = x - mu
    std = jnp.sqrt(jnp.mean(y * y, axis=0) + 1e-8)
    s = jnp.mean(std)
    B, _, H, W = x.shape
    extra = jnp.broadcast_to(s, (B, 1, H, W)).astype(x.dtype)
    return jnp.concatenate([x, extra], axis=1)


if __name__ == "__main__":
    key = jax.random.PRNGKey(0)
    B, C, H, W = 2, 4, 16, 16
    x = jax.random.normal(key, (B, C, H, W), dtype=jnp.float32)

    out = minibatch_stddev(x)
    jax.block_until_ready(out)

    ref = _reference(x)
    assert out.shape == (B, C + 1, H, W), out.shape
    assert out.dtype == x.dtype
    assert jnp.allclose(out, ref, atol=1e-5, rtol=1e-5), "mismatch vs reference"

    print("KERNEL_OK")
</pallas_src>

<mosaic_0001>
module attributes {stable_mosaic.version = 11 : i64} {
  func.func @_stddev_tiled_kernel(%arg0: i32, %arg1: memref<2x256xf32, #tpu.memory_space<vmem>>, %arg2: memref<2x256xf32, #tpu.memory_space<vmem>>, %arg3: memref<1xf32, #tpu.memory_space<smem>>) attributes {dimension_semantics = [#tpu.dimension_semantics<arbitrary>], iteration_bounds = array<i64: 5>, scalar_prefetch = 0 : i64, scratch_operands = 1 : i64, tpu.core_type = #tpu.core_type<tc>, window_params = [{transform_indices = @transform_0, window_bounds = array<i64: 2, 256>}, {transform_indices = @transform_1, window_bounds = array<i64: 2, 256>}]} {
    %c0_i32 = arith.constant 0 : i32
    %0 = arith.cmpi eq, %arg0, %c0_i32 : i32
    %1 = arith.extui %0 : i1 to i32
    %c0_i32_0 = arith.constant 0 : i32
    %2 = arith.cmpi ne, %1, %c0_i32_0 : i32
    scf.if %2 {
      %cst = arith.constant 0.000000e+00 : f32
      %c0 = arith.constant 0 : index
      %9 = memref.load %arg3[%c0] : memref<1xf32, #tpu.memory_space<smem>>
      memref.store %cst, %arg3[%c0] : memref<1xf32, #tpu.memory_space<smem>>
    } else {
    }
    %c4_i32 = arith.constant 4 : i32
    %3 = arith.cmpi slt, %arg0, %c4_i32 : i32
    %4 = arith.extui %3 : i1 to i32
    %c0_i32_1 = arith.constant 0 : i32
    %5 = arith.cmpi ne, %4, %c0_i32_1 : i32
    scf.if %5 {
      %c0 = arith.constant 0 : index
      %c0_4 = arith.constant 0 : index
      %9 = vector.load %arg1[%c0, %c0_4] : memref<2x256xf32, #tpu.memory_space<vmem>>, vector<2x256xf32>
      %c0_5 = arith.constant 0 : index
      %c0_6 = arith.constant 0 : index
      %10 = vector.load %arg2[%c0_5, %c0_6] : memref<2x256xf32, #tpu.memory_space<vmem>>, vector<2x256xf32>
      tpu.vector_store %arg2[%c0_5, %c0_6], %9 {strides = array<i32>} : memref<2x256xf32, #tpu.memory_space<vmem>>, vector<2x256xf32>,
      %cst = arith.constant dense<0.000000e+00> : vector<256xf32>
      %11 = vector.multi_reduction <add>, %9, %cst [0] : vector<2x256xf32> to vector<256xf32>
      %12 = vector.shape_cast %11 : vector<256xf32> to vector<1x256xf32>
      %cst_7 = arith.constant 5.000000e-01 : f32
      %13 = vector.broadcast %cst_7 : f32 to vector<1x256xf32>
      %14 = arith.mulf %12, %13 : vector<1x256xf32>
      %15 = vector.broadcast %14 : vector<1x256xf32> to vector<2x256xf32>
      %16 = arith.subf %9, %15 : vector<2x256xf32>
      %17 = vector.broadcast %14 : vector<1x256xf32> to vector<2x256xf32>
      %18 = arith.subf %9, %17 : vector<2x256xf32>
      %19 = arith.mulf %16, %18 : vector<2x256xf32>
      %cst_8 = arith.constant dense<0.000000e+00> : vector<256xf32>
      %20 = vector.multi_reduction <add>, %19, %cst_8 [0] : vector<2x256xf32> to vector<256xf32>
      %21 = vector.shape_cast %20 : vector<256xf32> to vector<1x256xf32>
      %cst_9 = arith.constant 5.000000e-01 : f32
      %22 = vector.broadcast %cst_9 : f32 to vector<1x256xf32>
      %23 = arith.mulf %21, %22 : vector<1x256xf32>
      %cst_10 = arith.constant 9.99999993E-9 : f32
      %24 = vector.broadcast %cst_10 : f32 to vector<1x256xf32>
      %25 = arith.addf %23, %24 : vector<1x256xf32>
      %26 = math.sqrt %25 : vector<1x256xf32>
      %c0_11 = arith.constant 0 : index
      %27 = memref.load %arg3[%c0_11] : memref<1xf32, #tpu.memory_space<smem>>
      %28 = vector.shape_cast %26 : vector<1x256xf32> to vector<1x1x256xf32>
      %cst_12 = arith.constant dense<0.000000e+00> : vector<1xf32>
      %29 = vector.multi_reduction <add>, %28, %cst_12 [1, 2] : vector<1x1x256xf32> to vector<1xf32>
      %30 = vector.shape_cast %29 : vector<1xf32> to vector<1x1x1xf32>
      %31 = vector.extract %30[0, 0, 0] : f32 from vector<1x1x1xf32>
      %32 = arith.addf %27, %31 : f32
      %c0_13 = arith.constant 0 : index
      %33 = memref.load %arg3[%c0_13] : memref<1xf32, #tpu.memory_space<smem>>
      memref.store %32, %arg3[%c0_13] : memref<1xf32, #tpu.memory_space<smem>>
    } else {
    }
    %c4_i32_2 = arith.constant 4 : i32
    %6 = arith.cmpi sge, %arg0, %c4_i32_2 : i32
    %7 = arith.extui %6 : i1 to i32
    %c0_i32_3 = arith.constant 0 : i32
    %8 = arith.cmpi ne, %7, %c0_i32_3 : i32
    scf.if %8 {
      %c0 = arith.constant 0 : index
      %9 = memref.load %arg3[%c0] : memref<1xf32, #tpu.memory_space<smem>>
      %cst = arith.constant 1.024000e+03 : f32
      %10 = arith.divf %9, %cst : f32
      %11 = vector.broadcast %10 : f32 to vector<2x256xf32>
      %c0_4 = arith.constant 0 : index
      %c0_5 = arith.constant 0 : index
      %12 = vector.load %arg2[%c0_4, %c0_5] : memref<2x256xf32, #tpu.memory_space<vmem>>, vector<2x256xf32>
      tpu.vector_store %arg2[%c0_4, %c0_5], %11 {strides = array<i32>} : memref<2x256xf32, #tpu.memory_space<vmem>>, vector<2x256xf32>,
    } else {
    }
    return
  }
  func.func @transform_0(%arg0: i32) -> (i32, i32) {
    %c3_i32 = arith.constant 3 : i32
    %0 = arith.minsi %arg0, %c3_i32 : i32
    %c0_i32 = arith.constant 0 : i32
    %c0_i32_0 = arith.constant 0 : i32
    return %c0_i32, %0 : i32, i32
  }
  func.func @transform_1(%arg0: i32) -> (i32, i32) {
    %c0_i32 = arith.constant 0 : i32
    %c0_i32_0 = arith.constant 0 : i32
    return %c0_i32, %arg0 : i32, i32
  }
}

</mosaic_0001>

<bundles_post_ra>
// kernel: tpu_custom_call.1
= control target key start
LH: loop header
LB: loop body
LE: loop exit
PB: predicated region body
PF: predicated region fallthrough
CT: control target
= control target key end

     0   :  { %6 = vsyncpa [#allocation4], 0  ;;  %s787_s0 = inlined_call_operand.hbm [shape: f32[2,1024], index: 0, kind: input, shape index: {}]   ;;  %s788_s1 = inlined_call_operand.hbm [shape: f32[2,1280], index: 1, kind: output, shape index: {}]  }
   0x1   :  { %8 = vsyncpa [#allocation4 + $0x1], 0 }
   0x2   :  { %9 = vsyncpa [#allocation5], 0 }
   0x3   :  { %11 = vsyncpa [#allocation5 + $0x1], 0  ;;  %s587_s6 = smov 0   ;;  %s589_s7 = smov 0  }
   0x4   :  { %s591_s8 = smov 0   ;;  %s593_s9 = smov 0  }
   0x5   :  { %s595_s10 = smov 0   ;;  %s597_s11 = smov 0  }
   0x6   :  { %s599_s12 = smov 0  }
   0x7 LB: > { %s621_s13 = sadd.s32 4294967295, %s571_s12   ;;  %s351_s14 = sadd.s32 4294967294, %s571_s12   ;;  %s571_s12 = sphi %s599_s12, %s807_s12   ;;  %s567_s11 = sphi %s597_s11, %s806_s11   ;;  %s563_s10 = sphi %s595_s10, %s805_s10   ;;  %s559_s9 = sphi %s593_s9, %s804_s9   ;;  %s555_s8 = sphi %s591_s8, %s803_s8   ;;  %s551_s7 = sphi %s589_s7, %s802_s7   ;;  %s547_s6 = sphi %s587_s6, %s801_s6  }
   0x8   : > { %s625_s15 = sadd.s32 1, %s571_s12   ;;  %p21_p0 = scmp.lt.s32.totalorder %s571_s12, 3 }
   0x9   : > { %p23_p1 = scmp.lt.s32.totalorder %s625_s15, 3  ;;  %s28_s16 = sadd.s32 1, %s567_s11 }
   0xa   : > { %s22_s17 = scalar_select %p21_p0, %s571_s12, 3 }
   0xb   : > { %s24_s18 = scalar_select %p23_p1, %s625_s15, 3 }
   0xc   : > { %p35_p2 = scmp.ne.s32.totalorder %s567_s11, %s563_s10  ;;  %p36_p3 = scmp.eq.s32.totalorder %s571_s12, 0 }
   0xd   : > { %s25_s19 = ssub.s32 %s22_s17, %s24_s18  ;;  %p41_p4 = scmp.ne.s32.totalorder %s563_s10, %s559_s9 }
   0xe   : > { %p26_p5 = scmp.eq.s32.totalorder %s25_s19, 0  ;;  %p636_p6 = por %p36_p3, %p35_p2 }
   0xf   : > { %p789_p7 = scmp.eq.s32.totalorder %s621_s13, 0  ;;  %s51_s21 = ssub.s32 %s571_s12, %s625_s15 }
  0x10   : > { %s644_s22 = scalar_select %p26_p5, %s567_s11, %s28_s16  }
  0x11   : > { %p648_p8 = por %p789_p7, %p41_p4  ;;  %p52_p9 = scmp.eq.s32.totalorder %s51_s21, 0 }
  0x12   : > { %s54_s24 = sadd.s32 1, %s555_s8  ;;  %p64_p10 = scmp.ne.s32.totalorder %s555_s8, %s551_s7 }
  0x13   : > { %s656_s25 = scalar_select %p52_p9, %s555_s8, %s54_s24  }
  0x14   : > { %p65_p11 = scmp.eq.s32.totalorder %s621_s13, 4  ;;  %p70_p12 = scmp.ne.s32.totalorder %s551_s7, %s547_s6 }
  0x15   : > { %p71_p13 = scmp.eq.s32.totalorder %s351_s14, 4  ;;  %p386_p1 = scmp.lt.s32.totalorder %s571_s12, 5 }
  0x16   : > { %p661_p0 = por %p65_p11, %p64_p10  ;;  %s91_s28 = sand.u32 1, %s567_s11  }
  0x17   : > { %p666_p2 = por %p71_p13, %p70_p12  ;;  %s354_s29 = sshll.u32 %s91_s28, 2 }
  0x18   : > { %s793_s26 = scalar_select %p661_p0, 1, 0 }
  0x19   : > { %s794_s27 = scalar_select %p666_p2, 1, 0 }
  0x1a   : > { %s368_s30 = sshll.u32 %s22_s17, 6  ;;  %s95_s5 = scalar_lea.vmem [#allocation3], %s354_s29 }
  0x1b   : > { %s674_s4 = scalar_lea.hbm %s787_s0, %s368_s30  ;;  %s105_s9 = sshll.u32 %s95_s5, 4  ;;  %s676_s9 = int_to_ptr.vmem [resolvable:$true] %s105_s9 }
  0x1c   : > { %p680_p3 = pnand %p386_p1, %p636_p6  ;;  %s92_s16 = scalar_lea.sflag [#allocation4], %s91_s28 }
  0x1d   : > { %s451_s17 = scalar_lea.hbm %s674_s4, 64  ;;  %s456_s20 = scalar_lea.hbm %s787_s0, 256 }
  0x1e   : > { %p452_p9 = scmp.ne.s32.totalorder %s674_s4, %s451_s17  ;;  %p453_p10 = pneg %p680_p3 }
  0x1f   : > { %p457_p6 = scmp.lt.u32.totalorder %s674_s4, %s787_s0  ;;  %p458_p13 = scmp.lt.u32.totalorder %s456_s20, %s451_s17 }
  0x20   : > { %p454_p11 = pnand %p453_p10, %p452_p9  ;;  %p460_p7 = scmp.lt.u32.totalorder %s451_s17, %s674_s4 }
  0x21   : > { %p459_p1 = por %p458_p13, %p457_p6 }
  0x22   : > { %p455_p12 = pneg %p454_p11 }
  0x23   : > { %p461_p4 = por %p460_p7, %p459_p1 }
  0x25   : > { %p462_p5 = pnand %p461_p4, %p455_p12 }
  0x27   : > { %465 = shalt.err (!%p462_p5)
}
  0x28   : > { %s466_s28 = scalar_lea.vmem %s676_s9, 64  ;;  %s573_s29 = smov [#allocation3]  }
  0x29   : > { %p467_p9 = scmp.ne.s32.totalorder %s676_s9, %s466_s28  ;;  %s471_s30 = sshll.u32 %s573_s29, 4  ;;  %s472_s30 = int_to_ptr.vmem [resolvable:$false] %s471_s30 }
  0x2a   : > { %s473_s2 = scalar_lea.vmem %s472_s30, 128  ;;  %p474_p0 = scmp.lt.s32.totalorder %s676_s9, %s472_s30 }
  0x2b   : > { %p469_p11 = pnand %p467_p9, %p453_p10  ;;  %p475_p6 = scmp.lt.s32.totalorder %s473_s2, %s466_s28 }
  0x2d   : > { %p470_p2 = pneg %p469_p11  ;;  %p476_p13 = por %p475_p6, %p474_p0 }
  0x2f   : > { %p477_p7 = pnand %p476_p13, %p470_p2 }
  0x31   : > { %480 = shalt.err (!%p477_p7)
}
  0x32   : > { %381 = dma.hbm_to_vmem [thread:$0]  (!%p680_p3), %s674_s4, 64, %s676_s9, %s92_s16  }
  0x33   : > { %p796_p4 = scmp.lt.s32.totalorder %s571_s12, 6  ;;  %p797_p5 = scmp.ge.s32.totalorder %s571_s12, 1 }
  0x35   : > { %p111_p10 = pnand %p797_p5, %p796_p4 }
  0x36   : > { %s116_s3 = sand.u32 (!%p111_p10), 1, %s563_s10  }
  0x37   : > { %114 = sbr.rel (%p111_p10) target bundleno = 382 (0x17e), region = 24  ;;  %s358_s5 = sshll.u32 (!%p111_p10), %s116_s3, 2 }
  0x38   : > { %s117_s17 = scalar_lea.sflag (!%p111_p10), [#allocation4], %s116_s3  ;;  %s120_s18 = scalar_lea.vmem (!%p111_p10), [#allocation3], %s358_s5 }
  0x3e   : > { %538 = dma.done.wait (%p648_p8), %s117_s17, 64  }
  0x3f   : > { %540 = vsyncadd (%p648_p8), %s117_s17, 4294967232  ;;  %s136_s14 = sand.u32 1, %s551_s7   ;;  %s574_s4 = smov 0.0  }
  0x40   : > { %p798_p0 = scmp.eq.s32.totalorder %s621_s13, 0  ;;  %s359_s9 = sshll.u32 %s136_s14, 2 }
  0x41   : > { %s725_s16 = scalar_lea.vmem [#allocation6], %s359_s9  ;;  %p361_p2 = scmp.ge.s32.totalorder %s621_s13, 4 }
  0x42   : > { %375 = sst [smem:[#allocation2]] (%p798_p0), %s574_s4  ;;  %v153_v0 = vld [vmem:[%s120_s18] sm:$0xf] (!%p361_p2)  ;;  %v159_v1 = vlaneseq (!%p361_p2)  ;;  %v575_v2 = vmov (!%p361_p2), 1983009808   ;;  %vm166_vm0 = vcmask (!%p361_p2), 1041408  }
  0x43   : > { %152 = sbr.rel (%p361_p2) target bundleno = 346 (0x15a), region = 36  ;;  %154 = vst [vmem:[%s725_s16] sm:$0xf] (!%p361_p2), %v153_v0  ;;  %v157_v3 = vunpack.c.l.s4 (!%p361_p2), %v575_v2  ;;  %vm240_vm4 = vcmask (!%p361_p2), 1040384   ;;  %s239_s23 = sld [smem:[#allocation2]] (!%p361_p2) }
  0x44   : > { %v160_v4 = vshrl.u32 (!%p361_p2), %v159_v1, 7 }
  0x45   : > { %v158_v5 = vunpack.c.0.s8 (!%p361_p2), %v157_v3 }
  0x47   : > { %v161_v6 = vsub.s32 (!%p361_p2), %v158_v5, %v160_v4 }
  0x49   : > { %v162_v7 = vrot.slane (!%p361_p2), %v153_v0, %v161_v6 }
  0x4b   : > { %v163_v8 = vcombine.high %v162_v7, %v162_v7  ;;  %v167_v9 = vsel %vm166_vm0, %v162_v7, 0.0 }
  0x4c   : > { %v168_v10 = vrot.slane %v167_v9, 4 }
  0x4d   : > { %v174_v11 = vsel %vm166_vm0, %v163_v8, 0.0 }
  0x4e   : > { %v169_v12 = vadd.f32 %v168_v10, %v167_v9  ;;  %v175_v13 = vrot.slane %v174_v11, 4 }
  0x50   : > { %v170_v14 = vrot.slane %v169_v12, 2  ;;  %v176_v15 = vadd.f32 %v175_v13, %v174_v11 }
  0x52   : > { %v171_v16 = vadd.f32 %v170_v14, %v169_v12  ;;  %v177_v17 = vrot.slane %v176_v15, 2 }
  0x54   : > { %v172_v18 = vrot.slane %v171_v16, 1  ;;  %v178_v19 = vadd.f32 %v177_v17, %v176_v15 }
  0x56   : > { %v173_v20 = vadd.f32 %v172_v18, %v171_v16  ;;  %v179_v21 = vrot.slane %v178_v19, 1 }
  0x58   : > { %v180_v22 = vadd.f32 %v179_v21, %v178_v19  ;;  %v181_v23 = vmul.f32 0.5, %v173_v20 }
  0x5a   : > { %v182_v24 = vmul.f32 0.5, %v180_v22 }
  0x5c   : > { %v185_v25 = vcombine.low %v181_v23, %v182_v24 }
  0x5e   : > { %v192_v26 = vrot.slane %v185_v25, %v161_v6 }
  0x60   : > { %v194_v27 = vsub.f32 %v153_v0, %v192_v26 }
  0x62   : > { %v195_v28 = vmul.f32 %v194_v27, %v194_v27 }
  0x64   : > { %v203_v29 = vrot.slane %v195_v28, %v161_v6 }
  0x66   : > { %v204_v30 = vcombine.high %v203_v29, %v203_v29  ;;  %v207_v31 = vsel %vm166_vm0, %v203_v29, 0.0 }
  0x67   : > { %v208_v32 = vrot.slane %v207_v31, 4 }
  0x68   : > { %v214_v33 = vsel %vm166_vm0, %v204_v30, 0.0 }
  0x69   : > { %v209_v34 = vadd.f32 %v208_v32, %v207_v31  ;;  %v215_v35 = vrot.slane %v214_v33, 4 }
  0x6b   : > { %v210_v36 = vrot.slane %v209_v34, 2  ;;  %v216_v37 = vadd.f32 %v215_v35, %v214_v33 }
  0x6d   : > { %v211_v38 = vadd.f32 %v210_v36, %v209_v34  ;;  %v217_v39 = vrot.slane %v216_v37, 2 }
  0x6f   : > { %v212_v40 = vrot.slane %v211_v38, 1  ;;  %v218_v41 = vadd.f32 %v217_v39, %v216_v37 }
  0x71   : > { %v213_v42 = vadd.f32 %v212_v40, %v211_v38  ;;  %v219_v43 = vrot.slane %v218_v41, 1 }
  0x73   : > { %v220_v44 = vadd.f32 %v219_v43, %v218_v41  ;;  %v221_v45 = vmul.f32 0.5, %v213_v42 }
  0x75   : > { %v222_v46 = vmul.f32 0.5, %v220_v44  ;;  %v223_v47 = vadd.f32 1e-08, %v221_v45 }
  0x77   : > { %v224_v48 = vadd.f32 1e-08, %v222_v46  ;;  %447 = vrsqrt.f32 %v223_v47  ;;  %vm227_vm1 = vcmp.eq.f32.partialorder %v223_v47, inf  ;;  %v230_v50 = vand.u32 2147483648, %v223_v47 }
  0x78   : > { %vm229_vm2 = vcmp.eq.f32.partialorder %v223_v47, 0.0 }
  0x79   : > { %449 = vrsqrt.f32 %v224_v48  ;;  %vm234_vm3 = vcmp.eq.f32.partialorder %v224_v48, inf  ;;  %v237_v53 = vand.u32 2147483648, %v224_v48  ;;  %vm236_vm5 = vcmp.eq.f32.partialorder %v224_v48, 0.0 }
  0x81   : > { %v448_v49 = vpop.eup %447 }
  0x82   : > { %v226_v51 = vmul.f32 %v448_v49, %v223_v47 }
  0x83   : > { %v450_v52 = vpop.eup %449 }
  0x84   : > { %v228_v54 = vsel %vm227_vm1, %v223_v47, %v226_v51  ;;  %v233_v55 = vmul.f32 %v450_v52, %v224_v48 }
  0x85   : > { %v231_v56 = vsel %vm229_vm2, %v230_v50, %v228_v54 }
  0x86   : > { %v235_v57 = vsel %vm234_vm3, %v224_v48, %v233_v55  ;;  %v241_v58 = vsel %vm240_vm4, %v231_v56, 0.0 }
  0x87   : > { %v238_v59 = vsel %vm236_vm5, %v237_v53, %v235_v57 }
  0x88   : > { %v242_v60 = vsel %vm240_vm4, %v238_v59, 0.0 }
  0x89   : > { %v243_v61 = vadd.f32 %v242_v60, %v241_v58 }
  0x8b   : > { %244 = vadd.xlane.f32.xlu0 %v243_v61 }
 0x118   : > { %v245_v62 = vpop.xlane.xlu0 %244 }
 0x119   : > { %v246_v63 = vrot.slane %v245_v62, 4 }
 0x11b   : > { %v247_v0 = vadd.f32 %v246_v63, %v245_v62 }
 0x11d   : > { %v248_v1 = vrot.slane %v247_v0, 2 }
 0x11f   : > { %v249_v2 = vadd.f32 %v248_v1, %v247_v0 }
 0x121   : > { %v250_v3 = vrot.slane %v249_v2, 1 }
 0x123   : > { %v251_v4 = vadd.f32 %v250_v3, %v249_v2 }
 0x125   : > { %370 = vpush %v251_v4 }
 0x156   : > { %s371_s19 = spop %370 }
 0x157   : > { %s253_s20 = sadd.f32 %s371_s19, %s239_s23 }
 0x159   : > { %255 = sst [smem:[#allocation2]] %s253_s20 }
 0x15a PF: > { %p362_p8 = scmp.lt.s32.totalorder %s621_s13, 4 }
 0x15b   : > { %s260_s21 = sld [smem:[#allocation2]] (!%p362_p8) }
 0x15c   : > { %259 = sbr.rel (%p362_p8) target bundleno = 357 (0x165), region = 40 }
 0x161   : > { %s263_s24 = smul.f32 (!%p362_p8), 0.0009765625, %s260_s21 }
 0x163   : > { %v264_v5 = vstv %s263_s24 }
 0x164   : > { %265 = vst [vmem:[%s725_s16] sm:$0xf] %v264_v5 }
 0x165 PF: > { %s369_s28 = sshll.u32 %s621_s13, 6  ;;  %s281_s3 = sshll.u32 %s725_s16, 4  ;;  %s282_s3 = int_to_ptr.vmem [resolvable:$true] %s281_s3 }
 0x166   : > { %s739_s2 = scalar_lea.hbm %s788_s1, %s369_s28  ;;  %s267_s5 = scalar_lea.sflag [#allocation5], %s136_s14 }
 0x167   : > { %s481_s17 = scalar_lea.vmem %s282_s3, 64  ;;  %p799_p12 = scmp.ne.s32.totalorder %s793_s26, 0 }
 0x168   : > { %p482_p3 = scmp.ne.s32.totalorder %s282_s3, %s481_s17  ;;  %s576_s18 = smov [#allocation6]  }
 0x169   : > { %s485_s4 = sshll.u32 %s576_s18, 4  ;;  %s486_s4 = int_to_ptr.vmem [resolvable:$false] %s485_s4 }
 0x16a   : > { %p483_p1 = pnand %p482_p3, %p799_p12  ;;  %s487_s9 = scalar_lea.vmem %s486_s4, 128 }
 0x16b   : > { %p488_p11 = scmp.lt.s32.totalorder %s282_s3, %s486_s4  ;;  %p489_p6 = scmp.lt.s32.totalorder %s487_s9, %s481_s17 }
 0x16c   : > { %p484_p9 = pneg %p483_p1 }
 0x16d   : > { %p490_p13 = por %p489_p6, %p488_p11 }
 0x16f   : > { %p491_p7 = pnand %p490_p13, %p484_p9 }
 0x171   : > { %494 = shalt.err (!%p491_p7)
}
 0x172   : > { %s495_s13 = scalar_lea.hbm %s739_s2, 64  ;;  %s499_s23 = scalar_lea.hbm %s788_s1, 320 }
 0x173   : > { %p496_p4 = scmp.ne.s32.totalorder %s739_s2, %s495_s13  ;;  %p500_p0 = scmp.lt.u32.totalorder %s739_s2, %s788_s1 }
 0x174   : > { %p501_p2 = scmp.lt.u32.totalorder %s499_s23, %s495_s13  ;;  %p503_p3 = scmp.lt.u32.totalorder %s495_s13, %s739_s2 }
 0x175   : > { %p497_p5 = pnand %p496_p4, %p799_p12 }
 0x176   : > { %p502_p8 = por %p501_p2, %p500_p0 }
 0x177   : > { %p498_p10 = pneg %p497_p5 }
 0x178   : > { %p504_p1 = por %p503_p3, %p502_p8 }
 0x17a   : > { %p505_p9 = pnand %p504_p1, %p498_p10 }
 0x17c   : > { %508 = shalt.err (!%p505_p9)
}
 0x17d   : > { %376 = dma.vmem_to_hbm [thread:$0]  (%p799_p12), %s282_s3, 64, %s739_s2, %s267_s5  }
 0x17e PF: > { %p388_p11 = scmp.ge.s32.totalorder %s571_s12, 2  ;;  %s293_s21 = sand.u32 1, %s547_s6  }
 0x17f   : > { %p800_p6 = scmp.ne.s32.totalorder %s794_s27, 0  ;;  %s294_s24 = scalar_lea.sflag [#allocation5], %s293_s21 }
 0x181   : > { %p383_p13 = pnand %p388_p11, %p800_p6 }
 0x183   : > { %542 = dma.done.wait (!%p383_p13), %s294_s24, 64  }
 0x184   : > { %544 = vsyncadd (!%p383_p13), %s294_s24, 4294967232  ;;  %p14_p12 = scmp.ge.s32.totalorder %s625_s15, 7   ;;  %s801_s6 = smov %s551_s7 }
 0x185   : > { %s802_s7 = smov %s555_s8  ;;  %s803_s8 = smov %s656_s25 }
 0x186   : > { %s804_s9 = smov %s563_s10  ;;  %s805_s10 = smov %s567_s11 }
 0x187   : > { %s806_s11 = smov %s644_s22  ;;  %s807_s12 = smov %s625_s15 }
 0x188   :  { %16 = sbr.rel (!%p14_p12) target bundleno = 7 (0x7), region = 83 }
 0x18f   :  { %299 = vsyncpa [#allocation4], 1 }
 0x190   :  { %301 = vsyncpa [#allocation4 + $0x1], 1 }
 0x191   :  { %302 = vsyncpa [#allocation5], 1 }
 0x192   :  { %304 = vsyncpa [#allocation5 + $0x1], 1 }

</bundles_post_ra>
